<compile_context>
chip_gen: v7x
topology: tpu7x:2x2x1
jax: 0.10.0
libtpu: 0.0.40
codegen_flags: <defaults>
</compile_context>

<pallas_src>
import functools
import inspect

import jax
import jax.numpy as jnp
from jax.experimental import pallas as pl
from jax.experimental.pallas import tpu as pltpu


def _round_up(n, m):
    return ((n + m - 1) // m) * m


def _cdiv(a, b):
    return (a + b - 1) // b


# ---------------------------------------------------------------------------
# One-time hardware / feature probes (cached per process)
# ---------------------------------------------------------------------------

@functools.lru_cache(maxsize=None)
def _tpu_budget():
    """Return (vmem_limit_cap_bytes, default_batch_tile), gated by generation."""
    vmem_bytes = None
    try:
        info = pltpu.get_tpu_info()
        vmem_bytes = getattr(info, "vmem_capacity_bytes", None)
    except Exception:
        vmem_bytes = None
    if vmem_bytes is None:
        vmem_bytes = 64 << 20          # conservative: assume v7x-sized VMEM
    if vmem_bytes >= (96 << 20):       # v5e / v6e: 128 MiB per TensorCore
        return (104 << 20), 512
    return (52 << 20), 256             # v7x: 64 MiB per TensorCore


@functools.lru_cache(maxsize=None)
def _single_buffer_supported():
    """Feature probe for pl.BlockSpec(..., pipeline_mode=pl.Buffered(1)).

    Compiles + runs a trivial 8x128 copy kernel exactly once per process. The
    real MLP kernel is never compiled twice and its own errors are never
    masked (replaces the old broad try/except around the real pallas_call).
    """
    if not hasattr(pl, "Buffered"):
        return False
    try:
        sig = inspect.signature(pl.BlockSpec)
    except (TypeError, ValueError):
        return False
    if "pipeline_mode" not in sig.parameters:
        return False

    def _copy(x_ref, o_ref):
        o_ref[...] = x_ref[...]

    try:
        fn = pl.pallas_call(
            _copy,
            out_shape=jax.ShapeDtypeStruct((8, 128), jnp.float32),
            grid=(1,),
            in_specs=[pl.BlockSpec((8, 128), lambda i: (0, 0),
                                   pipeline_mode=pl.Buffered(1))],
            out_specs=pl.BlockSpec((8, 128), lambda i: (0, 0)),
        )
        jax.block_until_ready(fn(jnp.zeros((8, 128), jnp.float32)))
        return True
    except Exception:
        return False


# ---------------------------------------------------------------------------
# Parameter preparation (do once at init, reuse across forward calls)
# ---------------------------------------------------------------------------

def prepare_params(params, *, compute_dtype=jnp.bfloat16):
    """One-time parameter prep.

    Expects transposed weights w{i}: (in, out) and biases b{i}: (out,) or
    (1, out).  Casts weights to `compute_dtype`, biases to f32, and zero-pads
    every hidden / class dim up to a multiple of 128 lanes.  Padding is exact:
    padded activations are relu(0 + 0) = 0 and padded logit columns are sliced
    off by the wrapper.  The activation input dim (x's feature dim) is left
    unpadded so x never needs per-call padding.
    """
    if isinstance(params, dict) and params.get("_prepared", False):
        return params

    ws, bs = [], []
    for idx in range(1, 5):
        ws.append(jnp.asarray(params[f"w{idx}"]))
        bs.append(jnp.asarray(params[f"b{idx}"]).reshape(1, -1))

    input_dim = int(ws[0].shape[0])
    num_classes = int(ws[3].shape[1])

    padded_ws, padded_bs = [], []
    prev_out_pad = 0  # rows added to this layer's contraction dim
    for w, b in zip(ws, bs):
        d_out = w.shape[1]
        out_pad = _round_up(d_out, 128) - d_out
        w = jnp.pad(w, ((0, prev_out_pad), (0, out_pad)))
        b = jnp.pad(b, ((0, 0), (0, out_pad)))
        padded_ws.append(w.astype(compute_dtype))
        padded_bs.append(b.astype(jnp.float32))
        prev_out_pad = out_pad

    return {
        "_prepared": True,
        "input_dim": input_dim,
        "num_classes": num_classes,
        "ws": tuple(padded_ws),
        "bs": tuple(padded_bs),
    }


# ---------------------------------------------------------------------------
# Kernel
# ---------------------------------------------------------------------------

def _mlp_kernel(x_ref,
                w1_ref, b1_ref,
                w2_ref, b2_ref,
                w3_ref, b3_ref,
                w4_ref, b4_ref,
                o_ref):
    """Four fused Linear layers (+ReLU on the first three), f32 accumulation."""
    cdt = w1_ref.dtype                       # MXU operand dtype (bf16 or f32)
    x = x_ref[...].astype(cdt)               # in-kernel cast (VPU has slack)

    h = jnp.dot(x, w1_ref[...], preferred_element_type=jnp.float32)
    h = jnp.maximum(h + b1_ref[...], 0.0)    # f32 bias/ReLU epilogue

    h = jnp.dot(h.astype(cdt), w2_ref[...], preferred_element_type=jnp.float32)
    h = jnp.maximum(h + b2_ref[...], 0.0)

    h = jnp.dot(h.astype(cdt), w3_ref[...], preferred_element_type=jnp.float32)
    h = jnp.maximum(h + b3_ref[...], 0.0)

    y = jnp.dot(h.astype(cdt), w4_ref[...], preferred_element_type=jnp.float32)
    o_ref[...] = (y + b4_ref[...]).astype(o_ref.dtype)


# ---------------------------------------------------------------------------
# Wrapper
# ---------------------------------------------------------------------------

def supervised_lnn_forward(x, params, *, batch_tile=None,
                           compute_dtype=jnp.bfloat16,
                           single_buffer_weights=True):
    """x: (B, input_dim).  params: raw dict from init_params or (preferred)
    a prepared dict from prepare_params — prepare once, reuse across calls."""
    prepared = prepare_params(params, compute_dtype=compute_dtype)
    ws, bs = prepared["ws"], prepared["bs"]
    num_classes = prepared["num_classes"]

    B, input_dim = x.shape
    if input_dim != prepared["input_dim"]:
        raise ValueError(f"input_dim mismatch: {input_dim} vs "
                         f"{prepared['input_dim']}")
    out_dtype = x.dtype
    h1p, h2p, h3p = ws[0].shape[1], ws[1].shape[1], ws[2].shape[1]
    cp = ws[3].shape[1]

    vmem_cap, default_bt = _tpu_budget()
    if batch_tile is None:
        batch_tile = default_bt

    # Balanced, sublane-aligned batch tile; ragged last block masked by Pallas.
    pack = 16 if jnp.dtype(x.dtype).itemsize == 2 else 8
    n_tiles = max(1, _cdiv(B, int(batch_tile)))
    bt = max(pack, _round_up(_cdiv(B, n_tiles), pack))
    grid = (_cdiv(B, bt),)

    use_single = bool(single_buffer_weights) and _single_buffer_supported()

    # VMEM budget: resident weights (single or double buffered) + pipelined
    # x/out tiles + f32 intermediate headroom, clamped to the generation cap.
    weight_bytes = sum(int(a.size) * a.dtype.itemsize for a in ws + bs)
    tile_bytes = 2 * bt * (input_dim * jnp.dtype(x.dtype).itemsize
                           + cp * jnp.dtype(out_dtype).itemsize)
    act_bytes = 2 * bt * (h1p + h2p + h3p + cp) * 4
    need = ((1 if use_single else 2) * weight_bytes
            + tile_bytes + act_bytes + (8 << 20))
    vmem_limit = int(min(max(need, 32 << 20), vmem_cap))

    flops = 2 * B * (input_dim * h1p + h1p * h2p + h2p * h3p + h3p * cp)
    bytes_accessed = int(x.size * x.dtype.itemsize + weight_bytes
                         + B * cp * jnp.dtype(out_dtype).itemsize)
    cost = pl.CostEstimate(flops=int(flops), transcendentals=0,
                           bytes_accessed=bytes_accessed)

    if use_single:
        def _res_spec(a):  # constant index_map -> single resident buffer
            return pl.BlockSpec(a.shape, lambda i: (0, 0),
                                pipeline_mode=pl.Buffered(1))
    else:
        def _res_spec(a):
            return pl.BlockSpec(a.shape, lambda i: (0, 0))

    in_specs = [pl.BlockSpec((bt, input_dim), lambda i: (i, 0))]  # x tile
    for w, b in zip(ws, bs):
        in_specs += [_res_spec(w), _res_spec(b)]

    out = pl.pallas_call(
        _mlp_kernel,
        out_shape=jax.ShapeDtypeStruct((B, cp), out_dtype),
        grid_spec=pltpu.PrefetchScalarGridSpec(
            num_scalar_prefetch=0,
            grid=grid,
            in_specs=in_specs,
            out_specs=pl.BlockSpec((bt, cp), lambda i: (i, 0)),
        ),
        compiler_params=pltpu.CompilerParams(
            dimension_semantics=("parallel",),
            vmem_limit_bytes=vmem_limit),
        cost_estimate=cost,
    )(x, ws[0], bs[0], ws[1], bs[1], ws[2], bs[2], ws[3], bs[3])

    # Padded class columns are exact zeros; slice before any softmax/argmax.
    return out[:, :num_classes]


# ---------------------------------------------------------------------------
# Reference / init / demo
# ---------------------------------------------------------------------------

def init_params(key, input_dim, inner_dim, num_classes, dtype=jnp.float32):
    """Deterministic parameter init. Weights stored transposed: (in, out)."""
    dims = [
        (input_dim, inner_dim * 4),
        (inner_dim * 4, inner_dim * 2),
        (inner_dim * 2, inner_dim),
        (inner_dim, num_classes),
    ]
    params = {}
    for idx, (d_in, d_out) in enumerate(dims, start=1):
        key, kw, kb = jax.random.split(key, 3)
        bound = 1.0 / (d_in ** 0.5)  # matches nn.Linear default init range
        params[f"w{idx}"] = jax.random.uniform(
            kw, (d_in, d_out), dtype, minval=-bound, maxval=bound)
        params[f"b{idx}"] = jax.random.uniform(
            kb, (1, d_out), dtype, minval=-bound, maxval=bound)
    return params


def reference_forward(x, params):
    h = jnp.maximum(x @ params["w1"] + params["b1"], 0.0)
    h = jnp.maximum(h @ params["w2"] + params["b2"], 0.0)
    h = jnp.maximum(h @ params["w3"] + params["b3"], 0.0)
    return h @ params["w4"] + params["b4"]


if __name__ == "__main__":
    key = jax.random.PRNGKey(0)
    kx, kx2, kp = jax.random.split(key, 3)

    batch, input_dim, inner_dim, num_classes = 16, 32, 32, 4
    x = jax.random.normal(kx, (batch, input_dim), jnp.float32)
    params = init_params(kp, input_dim, inner_dim, num_classes)
    ref = reference_forward(x, params)

    # Amortized parameter prep (per review): done once, reused across calls.
    prep_f32 = prepare_params(params, compute_dtype=jnp.float32)
    prep_bf16 = prepare_params(params, compute_dtype=jnp.bfloat16)

    # Full-f32 operand path: tight tolerance against the jnp reference.
    out_f32 = jax.block_until_ready(supervised_lnn_forward(x, prep_f32))
    assert out_f32.shape == (batch, num_classes)
    assert jnp.allclose(out_f32, ref, atol=1e-5, rtol=1e-5), "f32 path mismatch"

    # Default perf path (bf16 MXU operands, f32 accumulation): loose tolerance.
    out_bf16 = jax.block_until_ready(supervised_lnn_forward(x, prep_bf16))
    assert out_bf16.shape == (batch, num_classes)
    assert jnp.allclose(out_bf16, ref, atol=5e-2, rtol=5e-2), "bf16 path mismatch"

    # Ragged batch + multi-step grid (exercises the masked last block path).
    xb = jax.random.normal(kx2, (20, input_dim), jnp.float32)
    refb = reference_forward(xb, params)
    outb = jax.block_until_ready(
        supervised_lnn_forward(xb, prep_bf16, batch_tile=16))
    assert outb.shape == (20, num_classes)
    assert jnp.allclose(outb, refb, atol=5e-2, rtol=5e-2), "ragged path mismatch"

    print("KERNEL_OK")
</pallas_src>

<mosaic_0001>
module attributes {stable_mosaic.version = 11 : i64} {
  func.func @_copy(%arg0: i32, %arg1: memref<8x128xf32, #tpu.memory_space<vmem>>, %arg2: memref<8x128xf32, #tpu.memory_space<vmem>>) attributes {dimension_semantics = [#tpu.dimension_semantics<arbitrary>], iteration_bounds = array<i64: 1>, scalar_prefetch = 0 : i64, scratch_operands = 0 : i64, tpu.core_type = #tpu.core_type<tc>, window_params = [{pipeline_mode = #tpu.pipeline_mode<synchronous>, transform_indices = @transform_0, window_bounds = array<i64: 8, 128>}, {pipeline_mode = #tpu.pipeline_mode<synchronous>, transform_indices = @transform_1, window_bounds = array<i64: 8, 128>}]} {
    %c0 = arith.constant 0 : index
    %c0_0 = arith.constant 0 : index
    %0 = vector.load %arg1[%c0, %c0_0] : memref<8x128xf32, #tpu.memory_space<vmem>>, vector<8x128xf32>
    %c0_1 = arith.constant 0 : index
    %c0_2 = arith.constant 0 : index
    %1 = vector.load %arg2[%c0_1, %c0_2] : memref<8x128xf32, #tpu.memory_space<vmem>>, vector<8x128xf32>
    tpu.vector_store %arg2[%c0_1, %c0_2], %0 {strides = array<i32>} : memref<8x128xf32, #tpu.memory_space<vmem>>, vector<8x128xf32>,
    return
  }
  func.func @transform_0(%arg0: i32) -> (i32, i32) {
    %c0_i32 = arith.constant 0 : i32
    %c0_i32_0 = arith.constant 0 : i32
    %c0_i32_1 = arith.constant 0 : i32
    return %c0_i32, %c0_i32_0 : i32, i32
  }
  func.func @transform_1(%arg0: i32) -> (i32, i32) {
    %c0_i32 = arith.constant 0 : i32
    %c0_i32_0 = arith.constant 0 : i32
    %c0_i32_1 = arith.constant 0 : i32
    return %c0_i32, %c0_i32_0 : i32, i32
  }
}

module attributes {stable_mosaic.version = 11 : i64} {
  func.func @_mlp_kernel(%arg0: i32, %arg1: memref<16x32xf32, #tpu.memory_space<vmem>>, %arg2: memref<32x128xf32, #tpu.memory_space<vmem>>, %arg3: memref<1x128xf32, #tpu.memory_space<vmem>>, %arg4: memref<128x128xf32, #tpu.memory_space<vmem>>, %arg5: memref<1x128xf32, #tpu.memory_space<vmem>>, %arg6: memref<128x128xf32, #tpu.memory_space<vmem>>, %arg7: memref<1x128xf32, #tpu.memory_space<vmem>>, %arg8: memref<128x128xf32, #tpu.memory_space<vmem>>, %arg9: memref<1x128xf32, #tpu.memory_space<vmem>>, %arg10: memref<16x128xf32, #tpu.memory_space<vmem>>) attributes {dimension_semantics = [#tpu.dimension_semantics<parallel>], iteration_bounds = array<i64: 1>, scalar_prefetch = 0 : i64, scratch_operands = 0 : i64, tpu.core_type = #tpu.core_type<tc>, window_params = [{transform_indices = @transform_0, window_bounds = array<i64: 16, 32>}, {pipeline_mode = #tpu.pipeline_mode<synchronous>, transform_indices = @transform_1, window_bounds = array<i64: 32, 128>}, {pipeline_mode = #tpu.pipeline_mode<synchronous>, transform_indices = @transform_2, window_bounds = array<i64: 1, 128>}, {pipeline_mode = #tpu.pipeline_mode<synchronous>, transform_indices = @transform_3, window_bounds = array<i64: 128, 128>}, {pipeline_mode = #tpu.pipeline_mode<synchronous>, transform_indices = @transform_4, window_bounds = array<i64: 1, 128>}, {pipeline_mode = #tpu.pipeline_mode<synchronous>, transform_indices = @transform_5, window_bounds = array<i64: 128, 128>}, {pipeline_mode = #tpu.pipeline_mode<synchronous>, transform_indices = @transform_6, window_bounds = array<i64: 1, 128>}, {pipeline_mode = #tpu.pipeline_mode<synchronous>, transform_indices = @transform_7, window_bounds = array<i64: 128, 128>}, {pipeline_mode = #tpu.pipeline_mode<synchronous>, transform_indices = @transform_8, window_bounds = array<i64: 1, 128>}, {transform_indices = @transform_9, window_bounds = array<i64: 16, 128>}]} {
    %c0 = arith.constant 0 : index
    %c0_0 = arith.constant 0 : index
    %0 = vector.load %arg1[%c0, %c0_0] : memref<16x32xf32, #tpu.memory_space<vmem>>, vector<16x32xf32>
    %c0_1 = arith.constant 0 : index
    %c0_2 = arith.constant 0 : index
    %1 = vector.load %arg2[%c0_1, %c0_2] : memref<32x128xf32, #tpu.memory_space<vmem>>, vector<32x128xf32>
    %cst = arith.constant dense<0.000000e+00> : vector<16x128xf32>
    %2 = tpu.matmul %0, %1, %cst {dimension_numbers = #tpu.dot_dimension_numbers<[1], [0], [0], [1], [0, 0, 1, 1], [], []>} : vector<16x32xf32>, vector<32x128xf32>, vector<16x128xf32> -> vector<16x128xf32>
    %c0_3 = arith.constant 0 : index
    %c0_4 = arith.constant 0 : index
    %3 = vector.load %arg3[%c0_3, %c0_4] : memref<1x128xf32, #tpu.memory_space<vmem>>, vector<1x128xf32>
    %4 = vector.broadcast %3 : vector<1x128xf32> to vector<16x128xf32>
    %5 = arith.addf %2, %4 : vector<16x128xf32>
    %cst_5 = arith.constant 0.000000e+00 : f32
    %6 = vector.broadcast %cst_5 : f32 to vector<16x128xf32>
    %7 = arith.maximumf %5, %6 : vector<16x128xf32>
    %c0_6 = arith.constant 0 : index
    %c0_7 = arith.constant 0 : index
    %8 = vector.load %arg4[%c0_6, %c0_7] : memref<128x128xf32, #tpu.memory_space<vmem>>, vector<128x128xf32>
    %cst_8 = arith.constant dense<0.000000e+00> : vector<16x128xf32>
    %9 = tpu.matmul %7, %8, %cst_8 {dimension_numbers = #tpu.dot_dimension_numbers<[1], [0], [0], [1], [0, 0, 1, 1], [], []>} : vector<16x128xf32>, vector<128x128xf32>, vector<16x128xf32> -> vector<16x128xf32>
    %c0_9 = arith.constant 0 : index
    %c0_10 = arith.constant 0 : index
    %10 = vector.load %arg5[%c0_9, %c0_10] : memref<1x128xf32, #tpu.memory_space<vmem>>, vector<1x128xf32>
    %11 = vector.broadcast %10 : vector<1x128xf32> to vector<16x128xf32>
    %12 = arith.addf %9, %11 : vector<16x128xf32>
    %cst_11 = arith.constant 0.000000e+00 : f32
    %13 = vector.broadcast %cst_11 : f32 to vector<16x128xf32>
    %14 = arith.maximumf %12, %13 : vector<16x128xf32>
    %c0_12 = arith.constant 0 : index
    %c0_13 = arith.constant 0 : index
    %15 = vector.load %arg6[%c0_12, %c0_13] : memref<128x128xf32, #tpu.memory_space<vmem>>, vector<128x128xf32>
    %cst_14 = arith.constant dense<0.000000e+00> : vector<16x128xf32>
    %16 = tpu.matmul %14, %15, %cst_14 {dimension_numbers = #tpu.dot_dimension_numbers<[1], [0], [0], [1], [0, 0, 1, 1], [], []>} : vector<16x128xf32>, vector<128x128xf32>, vector<16x128xf32> -> vector<16x128xf32>
    %c0_15 = arith.constant 0 : index
    %c0_16 = arith.constant 0 : index
    %17 = vector.load %arg7[%c0_15, %c0_16] : memref<1x128xf32, #tpu.memory_space<vmem>>, vector<1x128xf32>
    %18 = vector.broadcast %17 : vector<1x128xf32> to vector<16x128xf32>
    %19 = arith.addf %16, %18 : vector<16x128xf32>
    %cst_17 = arith.constant 0.000000e+00 : f32
    %20 = vector.broadcast %cst_17 : f32 to vector<16x128xf32>
    %21 = arith.maximumf %19, %20 : vector<16x128xf32>
    %c0_18 = arith.constant 0 : index
    %c0_19 = arith.constant 0 : index
    %22 = vector.load %arg8[%c0_18, %c0_19] : memref<128x128xf32, #tpu.memory_space<vmem>>, vector<128x128xf32>
    %cst_20 = arith.constant dense<0.000000e+00> : vector<16x128xf32>
    %23 = tpu.matmul %21, %22, %cst_20 {dimension_numbers = #tpu.dot_dimension_numbers<[1], [0], [0], [1], [0, 0, 1, 1], [], []>} : vector<16x128xf32>, vector<128x128xf32>, vector<16x128xf32> -> vector<16x128xf32>
    %c0_21 = arith.constant 0 : index
    %c0_22 = arith.constant 0 : index
    %24 = vector.load %arg9[%c0_21, %c0_22] : memref<1x128xf32, #tpu.memory_space<vmem>>, vector<1x128xf32>
    %25 = vector.broadcast %24 : vector<1x128xf32> to vector<16x128xf32>
    %26 = arith.addf %23, %25 : vector<16x128xf32>
    %c0_23 = arith.constant 0 : index
    %c0_24 = arith.constant 0 : index
    %27 = vector.load %arg10[%c0_23, %c0_24] : memref<16x128xf32, #tpu.memory_space<vmem>>, vector<16x128xf32>
    tpu.vector_store %arg10[%c0_23, %c0_24], %26 {strides = array<i32>} : memref<16x128xf32, #tpu.memory_space<vmem>>, vector<16x128xf32>,
    return
  }
  func.func @transform_0(%arg0: i32) -> (i32, i32) {
    %c0_i32 = arith.constant 0 : i32
    %c0_i32_0 = arith.constant 0 : i32
    return %arg0, %c0_i32 : i32, i32
  }
  func.func @transform_1(%arg0: i32) -> (i32, i32) {
    %c0_i32 = arith.constant 0 : i32
    %c0_i32_0 = arith.constant 0 : i32
    %c0_i32_1 = arith.constant 0 : i32
    return %c0_i32, %c0_i32_0 : i32, i32
  }
  func.func @transform_2(%arg0: i32) -> (i32, i32) {
    %c0_i32 = arith.constant 0 : i32
    %c0_i32_0 = arith.constant 0 : i32
    %c0_i32_1 = arith.constant 0 : i32
    return %c0_i32, %c0_i32_0 : i32, i32
  }
  func.func @transform_3(%arg0: i32) -> (i32, i32) {
    %c0_i32 = arith.constant 0 : i32
    %c0_i32_0 = arith.constant 0 : i32
    %c0_i32_1 = arith.constant 0 : i32
    return %c0_i32, %c0_i32_0 : i32, i32
  }
  func.func @transform_4(%arg0: i32) -> (i32, i32) {
    %c0_i32 = arith.constant 0 : i32
    %c0_i32_0 = arith.constant 0 : i32
    %c0_i32_1 = arith.constant 0 : i32
    return %c0_i32, %c0_i32_0 : i32, i32
  }
  func.func @transform_5(%arg0: i32) -> (i32, i32) {
    %c0_i32 = arith.constant 0 : i32
    %c0_i32_0 = arith.constant 0 : i32
    %c0_i32_1 = arith.constant 0 : i32
    return %c0_i32, %c0_i32_0 : i32, i32
  }
  func.func @transform_6(%arg0: i32) -> (i32, i32) {
    %c0_i32 = arith.constant 0 : i32
    %c0_i32_0 = arith.constant 0 : i32
    %c0_i32_1 = arith.constant 0 : i32
    return %c0_i32, %c0_i32_0 : i32, i32
  }
  func.func @transform_7(%arg0: i32) -> (i32, i32) {
    %c0_i32 = arith.constant 0 : i32
    %c0_i32_0 = arith.constant 0 : i32
    %c0_i32_1 = arith.constant 0 : i32
    return %c0_i32, %c0_i32_0 : i32, i32
  }
  func.func @transform_8(%arg0: i32) -> (i32, i32) {
    %c0_i32 = arith.constant 0 : i32
    %c0_i32_0 = arith.constant 0 : i32
    %c0_i32_1 = arith.constant 0 : i32
    return %c0_i32, %c0_i32_0 : i32, i32
  }
  func.func @transform_9(%arg0: i32) -> (i32, i32) {
    %c0_i32 = arith.constant 0 : i32
    %c0_i32_0 = arith.constant 0 : i32
    return %arg0, %c0_i32 : i32, i32
  }
}

</mosaic_0001>

<bundles_post_ra>
// kernel: tpu_custom_call.1
= control target key start
LH: loop header
LB: loop body
LE: loop exit
PB: predicated region body
PF: predicated region fallthrough
CT: control target
= control target key end

     0   :  { %6 = vsyncpa [#allocation3], 0  ;;  %s124_s0 = inlined_call_operand.hbm [shape: f32[8,128], index: 0, kind: input, shape index: {}]   ;;  %s125_s1 = inlined_call_operand.hbm [shape: f32[8,128], index: 1, kind: output, shape index: {}]  }
   0x1   :  { %7 = vsyncpa [#allocation4], 0  ;;  %s88_s6 = smov [#allocation2]   ;;  %s40_s10 = scalar_lea.hbm %s124_s0, 128 }
   0x2   :  { %s14_s7 = sshll.u32 %s88_s6, 4  ;;  %p41_p0 = scmp.ne.s32.totalorder %s124_s0, %s40_s10  ;;  %s15_s7 = int_to_ptr.vmem [resolvable:$true] %s14_s7 }
   0x3   :  { %p44_p1 = scmp.lt.u32.totalorder %s40_s10, %s124_s0 }
   0x5   :  { %p46_p2 = pnand %p44_p1, %p41_p0 }
   0x7   :  { %49 = shalt.err (!%p46_p2)
}
   0x8   :  { %s50_s15 = scalar_lea.vmem %s15_s7, 128  ;;  %p55_p4 = scmp.lt.s32.totalorder %s15_s7, %s15_s7 }
   0x9   :  { %p51_p3 = scmp.ne.s32.totalorder %s15_s7, %s50_s15  ;;  %p56_p5 = scmp.lt.s32.totalorder %s50_s15, %s50_s15 }
   0xb   :  { %p57_p6 = por %p56_p5, %p55_p4 }
   0xd   :  { %p58_p7 = pnand %p57_p6, %p51_p3 }
   0xf   :  { %61 = shalt.err (!%p58_p7)
}
  0x10   :  { %17 = dma.hbm_to_vmem [thread:$0]  %s124_s0, 128, %s15_s7, [#allocation3]  }
  0x11   :  { %84 = dma.done.wait [#allocation3], 128  }
  0x12   :  { %85 = vsyncadd [#allocation3], 4294967168  ;;  %s89_s18 = smov [#allocation5]   ;;  %v21_v0 = vld [vmem:[#allocation2] sm:$0xff] }
  0x13   :  { %s29_s19 = sshll.u32 %s89_s18, 4  ;;  %22 = vst [vmem:[#allocation5] sm:$0xff] %v21_v0  ;;  %s30_s19 = int_to_ptr.vmem [resolvable:$true] %s29_s19 }
  0x14   :  { %s62_s20 = scalar_lea.vmem %s30_s19, 128  ;;  %p67_p9 = scmp.lt.s32.totalorder %s30_s19, %s30_s19 }
  0x15   :  { %p63_p8 = scmp.ne.s32.totalorder %s30_s19, %s62_s20  ;;  %p68_p10 = scmp.lt.s32.totalorder %s62_s20, %s62_s20 }
  0x17   :  { %p69_p11 = por %p68_p10, %p67_p9 }
  0x19   :  { %p70_p12 = pnand %p69_p11, %p63_p8 }
  0x1b   :  { %73 = shalt.err (!%p70_p12)
}
  0x1c   :  { %s74_s23 = scalar_lea.hbm %s125_s1, 128 }
  0x1d   :  { %p75_p13 = scmp.ne.s32.totalorder %s125_s1, %s74_s23  ;;  %p78_p0 = scmp.lt.u32.totalorder %s74_s23, %s125_s1 }
  0x1f   :  { %p80_p1 = pnand %p78_p0, %p75_p13 }
  0x21   :  { %83 = shalt.err (!%p80_p1)
}
  0x22   :  { %32 = dma.vmem_to_hbm [thread:$0]  %s30_s19, 128, %s125_s1, [#allocation4]  }
  0x23   :  { %86 = dma.done.wait [#allocation4], 128  }
  0x24   :  { %87 = vsyncadd [#allocation4], 4294967168 }
  0x25   :  { %36 = vsyncpa [#allocation3], 1 }
  0x26   :  { %37 = vsyncpa [#allocation4], 1 }

// kernel: tpu_custom_call.1
= control target key start
LH: loop header
LB: loop body
LE: loop exit
PB: predicated region body
PF: predicated region fallthrough
CT: control target
= control target key end

     0   :  { %14 = vsyncpa [#allocation3], 0  ;;  %s1127_s0 = inlined_call_operand.hbm [shape: f32[16,32], index: 0, kind: input, shape index: {}]   ;;  %s1128_s1 = inlined_call_operand.hbm [shape: f32[32,128], index: 1, kind: input, shape index: {}]   ;;  %s1129_s2 = inlined_call_operand.vmem [shape: f32[1,128], index: 2, kind: input, shape index: {}]   ;;  %s1130_s3 = inlined_call_operand.hbm [shape: f32[128,128], index: 3, kind: input, shape index: {}]   ;;  %s1131_s4 = inlined_call_operand.vmem [shape: f32[1,128], index: 4, kind: input, shape index: {}]   ;;  %s1132_s5 = inlined_call_operand.hbm [shape: f32[128,128], index: 5, kind: input, shape index: {}]   ;;  %s1133_s6 = inlined_call_operand.vmem [shape: f32[1,128], index: 6, kind: input, shape index: {}]   ;;  %s1134_s7 = inlined_call_operand.hbm [shape: f32[128,128], index: 7, kind: input, shape index: {}]   ;;  %s1135_s8 = inlined_call_operand.vmem [shape: f32[1,128], index: 8, kind: input, shape index: {}]   ;;  %s1136_s9 = inlined_call_operand.hbm [shape: f32[16,128], index: 9, kind: output, shape index: {}]  }
   0x1   :  { %15 = vsyncpa [#allocation6], 0 }
   0x2   :  { %16 = vsyncpa [#allocation9], 0 }
   0x3   :  { %17 = vsyncpa [#allocation4], 0  ;;  %s951_s30 = smov [#allocation5]   ;;  %s952_s11 = smov [#allocation8]  }
   0x4   :  { %s35_s10 = sshll.u32 %s951_s30, 4  ;;  %s63_s12 = sshll.u32 %s952_s11, 4  ;;  %s36_s10 = int_to_ptr.vmem [resolvable:$true] %s35_s10  ;;  %s1009_s12 = int_to_ptr.vmem [resolvable:$true] %s63_s12 }
   0x5   :  { %s811_s15 = scalar_lea.hbm %s1128_s1, 512 }
   0x6   :  { %p812_p0 = scmp.ne.s32.totalorder %s1128_s1, %s811_s15  ;;  %p815_p1 = scmp.lt.u32.totalorder %s811_s15, %s1128_s1 }
   0x8   :  { %p817_p2 = pnand %p815_p1, %p812_p0 }
   0xa   :  { %820 = shalt.err (!%p817_p2)
}
   0xb   :  { %s821_s20 = scalar_lea.vmem %s36_s10, 512  ;;  %p826_p4 = scmp.lt.s32.totalorder %s36_s10, %s36_s10 }
   0xc   :  { %p822_p3 = scmp.ne.s32.totalorder %s36_s10, %s821_s20  ;;  %p827_p5 = scmp.lt.s32.totalorder %s821_s20, %s821_s20 }
   0xe   :  { %p828_p6 = por %p827_p5, %p826_p4 }
  0x10   :  { %p829_p7 = pnand %p828_p6, %p822_p3 }
  0x12   :  { %832 = shalt.err (!%p829_p7)
}
  0x13   :  { %s953_s21 = smov 128   ;;  %s954_s22 = smov 8  }
  0x14   :  { %41 = dma.hbm_to_vmem [thread:$0]  %s1128_s1, 512, %s36_s10, [#allocation6], %s953_s21, %s953_s21, %s954_s22  }
  0x15   :  { %s833_s27 = scalar_lea.hbm %s1132_s5, 2048 }
  0x16   :  { %p834_p8 = scmp.ne.s32.totalorder %s1132_s5, %s833_s27  ;;  %p837_p9 = scmp.lt.u32.totalorder %s833_s27, %s1132_s5 }
  0x18   :  { %p839_p10 = pnand %p837_p9, %p834_p8 }
  0x1a   :  { %842 = shalt.err (!%p839_p10)
}
  0x1b   :  { %s843_s13 = scalar_lea.vmem %s1009_s12, 2048  ;;  %p848_p12 = scmp.lt.s32.totalorder %s1009_s12, %s1009_s12 }
  0x1c   :  { %p844_p11 = scmp.ne.s32.totalorder %s1009_s12, %s843_s13  ;;  %p849_p13 = scmp.lt.s32.totalorder %s843_s13, %s843_s13 }
  0x1e   :  { %p850_p0 = por %p849_p13, %p848_p12 }
  0x20   :  { %p851_p1 = pnand %p850_p0, %p844_p11 }
  0x22   :  { %854 = shalt.err (!%p851_p1)
}
  0x23   :  { %69 = dma.hbm_to_vmem [thread:$0]  %s1132_s5, 2048, %s1009_s12, [#allocation9], %s953_s21, %s953_s21, %s954_s22  }
  0x24   :  { %s955_s14 = smov [#allocation2]   ;;  %s956_s16 = smov [#allocation7]  }
  0x25   :  { %s23_s15 = sshll.u32 %s955_s14, 4  ;;  %s49_s17 = sshll.u32 %s956_s16, 4  ;;  %s24_s15 = int_to_ptr.vmem [resolvable:$true] %s23_s15  ;;  %s1046_s17 = int_to_ptr.vmem [resolvable:$true] %s49_s17 }
  0x26   :  { %s855_s20 = scalar_lea.hbm %s1127_s0, 256 }
  0x27   :  { %p856_p2 = scmp.ne.s32.totalorder %s1127_s0, %s855_s20  ;;  %p859_p3 = scmp.lt.u32.totalorder %s855_s20, %s1127_s0 }
  0x29   :  { %p861_p4 = pnand %p859_p3, %p856_p2 }
  0x2b   :  { %864 = shalt.err (!%p861_p4)
}
  0x2c   :  { %s865_s5 = scalar_lea.vmem %s24_s15, 256  ;;  %p870_p6 = scmp.lt.s32.totalorder %s24_s15, %s24_s15 }
  0x2d   :  { %p866_p5 = scmp.ne.s32.totalorder %s24_s15, %s865_s5  ;;  %p871_p7 = scmp.lt.s32.totalorder %s865_s5, %s865_s5 }
  0x2f   :  { %p872_p8 = por %p871_p7, %p870_p6 }
  0x31   :  { %p873_p9 = pnand %p872_p8, %p866_p5 }
  0x33   :  { %876 = shalt.err (!%p873_p9)
}
  0x34   :  { %29 = dma.hbm_to_vmem [thread:$0]  %s1127_s0, 256, %s24_s15, [#allocation3], %s953_s21, %s953_s21, %s954_s22  }
  0x35   :  { %s877_s30 = scalar_lea.hbm %s1130_s3, 2048 }
  0x36   :  { %p878_p10 = scmp.ne.s32.totalorder %s1130_s3, %s877_s30  ;;  %p881_p11 = scmp.lt.u32.totalorder %s877_s30, %s1130_s3 }
  0x38   :  { %p883_p12 = pnand %p881_p11, %p878_p10 }
  0x3a   :  { %886 = shalt.err (!%p883_p12)
}
  0x3b   :  { %s887_s14 = scalar_lea.vmem %s1046_s17, 2048  ;;  %p892_p0 = scmp.lt.s32.totalorder %s1046_s17, %s1046_s17 }
  0x3c   :  { %p888_p13 = scmp.ne.s32.totalorder %s1046_s17, %s887_s14  ;;  %p893_p1 = scmp.lt.s32.totalorder %s887_s14, %s887_s14 }
  0x3e   :  { %p894_p2 = por %p893_p1, %p892_p0 }
  0x40   :  { %p895_p3 = pnand %p894_p2, %p888_p13 }
  0x42   :  { %898 = shalt.err (!%p895_p3)
}
  0x43   :  { %55 = dma.hbm_to_vmem [thread:$0]  %s1130_s3, 2048, %s1046_s17, [#allocation6], %s953_s21, %s953_s21, %s954_s22  }
  0x44   :  { %s957_s16 = smov [#allocation10]   ;;  %s899_s23 = scalar_lea.hbm %s1134_s7, 2048 }
  0x45   :  { %s77_s18 = sshll.u32 %s957_s16, 4  ;;  %p900_p4 = scmp.ne.s32.totalorder %s1134_s7, %s899_s23  ;;  %s78_s18 = int_to_ptr.vmem [resolvable:$true] %s77_s18 }
  0x46   :  { %p903_p5 = scmp.lt.u32.totalorder %s899_s23, %s1134_s7 }
  0x48   :  { %p905_p6 = pnand %p903_p5, %p900_p4 }
  0x4a   :  { %908 = shalt.err (!%p905_p6)
}
  0x4b   :  { %s909_s12 = scalar_lea.vmem %s78_s18, 2048  ;;  %p914_p8 = scmp.lt.s32.totalorder %s78_s18, %s78_s18 }
  0x4c   :  { %p910_p7 = scmp.ne.s32.totalorder %s78_s18, %s909_s12  ;;  %p915_p9 = scmp.lt.s32.totalorder %s909_s12, %s909_s12 }
  0x4e   :  { %p916_p10 = por %p915_p9, %p914_p8 }
  0x50   :  { %p917_p11 = pnand %p916_p10, %p910_p7 }
  0x52   :  { %920 = shalt.err (!%p917_p11)
}
  0x53   :  { %83 = dma.hbm_to_vmem [thread:$0]  %s1134_s7, 2048, %s78_s18, [#allocation9], %s953_s21, %s953_s21, %s954_s22  }
  0x54   :  { %943 = dma.done.wait [#allocation3], 256  }
  0x55   :  { %944 = vsyncadd [#allocation3], 4294967040 }
  0x56   :  { %945 = dma.done.wait [#allocation6], 2560  }
  0x57   :  { %946 = vsyncadd [#allocation6], 4294964736 }
  0x58   :  { %947 = dma.done.wait [#allocation9], 4096  }
  0x59   :  { %948 = vsyncadd [#allocation9], 4294963200  ;;  %vm114_vm0 = vcmask 261120   ;;  %v103_v0 = vld [vmem:[#allocation5] sm:$0xff]  ;;  %v104_v1 = vld [vmem:[#allocation5 + $0x8] sm:$0xff]  ;;  %s958_s13 = smov [#allocation11]  }
  0x5a   :  { %v105_v2 = vld [vmem:[#allocation5 + $0x10] sm:$0xff]  ;;  %v699_v3 = vpack.c.bf16 %v104_v1, %v103_v0  ;;  %v106_v4 = vld [vmem:[#allocation5 + $0x18] sm:$0xff]  ;;  %v198_v7 = vld [vmem:[#allocation7] sm:$0xff]  ;;  %s503_s1 = sshll.u32 %s958_s13, 4  ;;  %s504_s1 = int_to_ptr.vmem [resolvable:$true] %s503_s1 }
  0x5b   :  { %v101_v5 = vld [vmem:[#allocation2] sm:$0xff]  ;;  %v703_v6 = vpack.c.bf16 %v106_v4, %v105_v2  ;;  %v199_v8 = vld [vmem:[#allocation7 + $0x8] sm:$0xff]  ;;  %v201_v11 = vld [vmem:[#allocation7 + $0x18] sm:$0xff]  ;;  %p926_p13 = scmp.lt.s32.totalorder %s504_s1, %s504_s1 }
  0x5c   :  { %591 = vmatprep.mubr.msk.f32.mxu0 %vm114_vm0, %v101_v5  ;;  %v200_v9 = vld [vmem:[#allocation7 + $0x10] sm:$0xff]  ;;  %700 = vmatprep.subr.bf16.mxu0 %v699_v3  ;;  %v707_v10 = vpack.c.bf16 %v199_v8, %v198_v7  ;;  %v202_v13 = vld [vmem:[#allocation7 + $0x20] sm:$0xff]  ;;  %v203_v14 = vld [vmem:[#allocation7 + $0x28] sm:$0xff] }
  0x5d   :  { %702 = vmatpush3.bf16.msra.mxu0 %v699_v3  ;;  %v711_v12 = vpack.c.bf16 %v201_v11, %v200_v9  ;;  %v715_v15 = vpack.c.bf16 %v203_v14, %v202_v13  ;;  %v102_v16 = vld [vmem:[#allocation2 + $0x8] sm:$0xff]  ;;  %v204_v17 = vld [vmem:[#allocation7 + $0x30] sm:$0xff]  ;;  %v206_v20 = vld [vmem:[#allocation7 + $0x40] sm:$0xff] }
  0x5e   :  { %704 = vmatprep.subr.bf16.mxu0 %v703_v6  ;;  %708 = vmatprep.subr.bf16.mxu1 %v707_v10  ;;  %v205_v18 = vld [vmem:[#allocation7 + $0x38] sm:$0xff]  ;;  %v207_v21 = vld [vmem:[#allocation7 + $0x48] sm:$0xff]  ;;  %v208_v23 = vld [vmem:[#allocation7 + $0x50] sm:$0xff] }
  0x5f   :  { %710 = vmatpush3.bf16.msra.mxu1 %v707_v10  ;;  %v719_v19 = vpack.c.bf16 %v205_v18, %v204_v17  ;;  %v723_v22 = vpack.c.bf16 %v207_v21, %v206_v20  ;;  %v209_v24 = vld [vmem:[#allocation7 + $0x58] sm:$0xff]  ;;  %v210_v26 = vld [vmem:[#allocation7 + $0x60] sm:$0xff]  ;;  %v211_v27 = vld [vmem:[#allocation7 + $0x68] sm:$0xff] }
  0x60   :  { %712 = vmatprep.subr.bf16.mxu1 %v711_v12  ;;  %v727_v25 = vpack.c.bf16 %v209_v24, %v208_v23  ;;  %v731_v28 = vpack.c.bf16 %v211_v27, %v210_v26  ;;  %v212_v29 = vld [vmem:[#allocation7 + $0x70] sm:$0xff]  ;;  %v213_v30 = vld [vmem:[#allocation7 + $0x78] sm:$0xff]  ;;  %v298_v32 = vld [vmem:[#allocation8] sm:$0xff] }
  0x61   :  { %706 = vmatpush3.bf16.msra.mxu0 %v703_v6  ;;  %v735_v31 = vpack.c.bf16 %v213_v30, %v212_v29  ;;  %v299_v33 = vld [vmem:[#allocation8 + $0x8] sm:$0xff]  ;;  %v300_v34 = vld [vmem:[#allocation8 + $0x10] sm:$0xff]  ;;  %v301_v36 = vld [vmem:[#allocation8 + $0x18] sm:$0xff] }
  0x62   :  { %v739_v35 = vpack.c.bf16 %v299_v33, %v298_v32  ;;  %v743_v37 = vpack.c.bf16 %v301_v36, %v300_v34  ;;  %v302_v38 = vld [vmem:[#allocation8 + $0x20] sm:$0xff]  ;;  %v303_v39 = vld [vmem:[#allocation8 + $0x28] sm:$0xff]  ;;  %v304_v41 = vld [vmem:[#allocation8 + $0x30] sm:$0xff] }
  0x63   :  { %714 = vmatpush3.bf16.msra.mxu1 %v711_v12  ;;  %v747_v40 = vpack.c.bf16 %v303_v39, %v302_v38  ;;  %v305_v42 = vld [vmem:[#allocation8 + $0x38] sm:$0xff]  ;;  %v306_v44 = vld [vmem:[#allocation8 + $0x40] sm:$0xff]  ;;  %v307_v45 = vld [vmem:[#allocation8 + $0x48] sm:$0xff] }
  0x64   :  { %592 = vmatmul.mubr.msk.f32.vlgmr.msra.gmra.mrb[0].mxu0 %vm114_vm0, %v102_v16  ;;  %716 = vmatprep.subr.bf16.mxu1 %v715_v15  ;;  %v751_v43 = vpack.c.bf16 %v305_v42, %v304_v41  ;;  %v755_v46 = vpack.c.bf16 %v307_v45, %v306_v44  ;;  %v308_v47 = vld [vmem:[#allocation8 + $0x50] sm:$0xff]  ;;  %v309_v48 = vld [vmem:[#allocation8 + $0x58] sm:$0xff]  ;;  %v310_v50 = vld [vmem:[#allocation8 + $0x60] sm:$0xff] }
  0x65   :  { %740 = vmatprep.subr.bf16.mxu0 %v739_v35  ;;  %v759_v49 = vpack.c.bf16 %v309_v48, %v308_v47  ;;  %v311_v51 = vld [vmem:[#allocation8 + $0x68] sm:$0xff]  ;;  %v517_v53 = vld [vmem:[%s1129_s2] ss:$0 sm:$0xff]  ;;  %v313_v61 = vld [vmem:[#allocation8 + $0x78] sm:$0xff] }
  0x66   :  { %742 = vmatpush3.bf16.msra.mxu0 %v739_v35  ;;  %v763_v52 = vpack.c.bf16 %v311_v51, %v310_v50  ;;  %v312_v60 = vld [vmem:[#allocation8 + $0x70] sm:$0xff]  ;;  %v398_v63 = vld [vmem:[#allocation10] sm:$0xff]  ;;  %v399_v0 = vld [vmem:[#allocation10 + $0x8] sm:$0xff] }
  0x67   :  { %718 = vmatpush3.bf16.msra.mxu1 %v715_v15  ;;  %744 = vmatprep.subr.bf16.mxu0 %v743_v37  ;;  %v767_v62 = vpack.c.bf16 %v313_v61, %v312_v60  ;;  %v400_v1 = vld [vmem:[#allocation10 + $0x10] sm:$0xff]  ;;  %v771_v2 = vpack.c.bf16 %v399_v0, %v398_v63  ;;  %v401_v3 = vld [vmem:[#allocation10 + $0x18] sm:$0xff]  ;;  %v402_v5 = vld [vmem:[#allocation10 + $0x20] sm:$0xff] }
  0x68   :  { %720 = vmatprep.subr.bf16.mxu1 %v719_v19  ;;  %v775_v4 = vpack.c.bf16 %v401_v3, %v400_v1  ;;  %v403_v6 = vld [vmem:[#allocation10 + $0x28] sm:$0xff]  ;;  %v404_v8 = vld [vmem:[#allocation10 + $0x30] sm:$0xff]  ;;  %v405_v9 = vld [vmem:[#allocation10 + $0x38] sm:$0xff] }
  0x69   :  { %v779_v7 = vpack.c.bf16 %v403_v6, %v402_v5  ;;  %v783_v10 = vpack.c.bf16 %v405_v9, %v404_v8  ;;  %v406_v11 = vld [vmem:[#allocation10 + $0x40] sm:$0xff]  ;;  %v407_v12 = vld [vmem:[#allocation10 + $0x48] sm:$0xff]  ;;  %v408_v14 = vld [vmem:[#allocation10 + $0x50] sm:$0xff] }
  0x6a   :  { %746 = vmatpush3.bf16.msra.mxu0 %v743_v37  ;;  %v787_v13 = vpack.c.bf16 %v407_v12, %v406_v11  ;;  %v409_v15 = vld [vmem:[#allocation10 + $0x58] sm:$0xff]  ;;  %v410_v17 = vld [vmem:[#allocation10 + $0x60] sm:$0xff]  ;;  %v411_v18 = vld [vmem:[#allocation10 + $0x68] sm:$0xff] }
  0x6b   :  { %722 = vmatpush3.bf16.msra.mxu1 %v719_v19  ;;  %748 = vmatprep.subr.bf16.mxu0 %v747_v40  ;;  %v791_v16 = vpack.c.bf16 %v409_v15, %v408_v14  ;;  %v795_v19 = vpack.c.bf16 %v411_v18, %v410_v17  ;;  %v520_v20 = vld [vmem:[%s1131_s4] ss:$0 sm:$0xff] }
  0x6c   :  { %724 = vmatprep.subr.bf16.mxu1 %v723_v22  ;;  %v412_v27 = vld [vmem:[#allocation10 + $0x70] sm:$0xff] }
  0x6d   :  { %v521_v30 = vld [vmem:[%s1133_s6] ss:$0 sm:$0xff]  ;;  %s921_s6 = scalar_lea.vmem %s504_s1, 256 }
  0x6e   :  { %750 = vmatpush3.bf16.msra.mxu0 %v747_v40  ;;  %v522_v37 = vld [vmem:[%s1135_s8] ss:$0 sm:$0xff]  ;;  %p922_p12 = scmp.ne.s32.totalorder %s504_s1, %s921_s6  ;;  %p927_p0 = scmp.lt.s32.totalorder %s921_s6, %s921_s6 }
  0x6f   :  { %726 = vmatpush3.bf16.msra.mxu1 %v723_v22  ;;  %752 = vmatprep.subr.bf16.mxu0 %v751_v43 }
  0x70   :  { %728 = vmatprep.subr.bf16.mxu1 %v727_v25  ;;  %p928_p1 = por %p927_p0, %p926_p13 }
  0x72   :  { %754 = vmatpush3.bf16.msra.mxu0 %v751_v43  ;;  %p929_p2 = pnand %p928_p1, %p922_p12 }
  0x73   :  { %730 = vmatpush3.bf16.msra.mxu1 %v727_v25  ;;  %756 = vmatprep.subr.bf16.mxu0 %v755_v46 }
  0x74   :  { %732 = vmatprep.subr.bf16.mxu1 %v731_v28 }
  0x76   :  { %758 = vmatpush3.bf16.msra.mxu0 %v755_v46 }
  0x77   :  { %734 = vmatpush3.bf16.msra.mxu1 %v731_v28  ;;  %760 = vmatprep.subr.bf16.mxu0 %v759_v49  ;;  %v413_v28 = vld [vmem:[#allocation10 + $0x78] sm:$0xff] }
  0x78   :  { %736 = vmatprep.subr.bf16.mxu1 %v735_v31  ;;  %v799_v29 = vpack.c.bf16 %v413_v28, %v412_v27 }
  0x7a   :  { %762 = vmatpush3.bf16.msra.mxu0 %v759_v49 }
  0x7b   :  { %738 = vmatpush3.bf16.msra.mxu1 %v735_v31  ;;  %764 = vmatprep.subr.bf16.mxu0 %v763_v52 }
  0x7c   :  { %772 = vmatprep.subr.bf16.mxu1 %v771_v2 }
  0x7e   :  { %766 = vmatpush3.bf16.msra.mxu0 %v763_v52 }
  0x7f   :  { %768 = vmatprep.subr.bf16.mxu0 %v767_v62 }
  0x82   :  { %770 = vmatpush3.bf16.msra.mxu0 %v767_v62 }
 0x137   :  { %v593_v54 = vpop.f32.mrb[0].mxu0 }
 0x138   :  { %v193_v55 = vadd.f32 %v593_v54, %v517_v53  ;;  %v187_v56 = vpop.f32.mrb[1].mxu0 }
 0x139   :  { %v188_v57 = vadd.f32 %v517_v53, %v187_v56 }
 0x13a   :  { %v197_v59 = vmax.f32 %v193_v55, 0.0 }
 0x13b   :  { %v196_v58 = vmax.f32 %v188_v57, 0.0 }
 0x13d   :  { %626 = vmatprep.mubr.f32.mxu1 %v196_v58 }
 0x13e   :  { %627 = vmatmul.mubr.f32.vlgmr.msra.gmra.mrb[0].mxu1 %v197_v59 }
 0x13f   :  { %774 = vmatpush3.bf16.msra.mxu1 %v771_v2 }
 0x140   :  { %776 = vmatprep.subr.bf16.mxu1 %v775_v4 }
 0x143   :  { %778 = vmatpush3.bf16.msra.mxu1 %v775_v4 }
 0x144   :  { %780 = vmatprep.subr.bf16.mxu1 %v779_v7 }
 0x147   :  { %782 = vmatpush3.bf16.msra.mxu1 %v779_v7 }
 0x148   :  { %784 = vmatprep.subr.bf16.mxu1 %v783_v10 }
 0x14b   :  { %786 = vmatpush3.bf16.msra.mxu1 %v783_v10 }
 0x14c   :  { %788 = vmatprep.subr.bf16.mxu1 %v787_v13 }
 0x14f   :  { %790 = vmatpush3.bf16.msra.mxu1 %v787_v13 }
 0x150   :  { %792 = vmatprep.subr.bf16.mxu1 %v791_v16 }
 0x153   :  { %794 = vmatpush3.bf16.msra.mxu1 %v791_v16 }
 0x154   :  { %796 = vmatprep.subr.bf16.mxu1 %v795_v19 }
 0x157   :  { %798 = vmatpush3.bf16.msra.mxu1 %v795_v19 }
 0x158   :  { %800 = vmatprep.subr.bf16.mxu1 %v799_v29 }
 0x15b   :  { %802 = vmatpush3.bf16.msra.mxu1 %v799_v29 }
 0x211   :  { %v628_v21 = vpop.f32.mrb[0].mxu1 }
 0x212   :  { %v293_v22 = vadd.f32 %v628_v21, %v520_v20  ;;  %v287_v23 = vpop.f32.mrb[1].mxu1 }
 0x213   :  { %v288_v24 = vadd.f32 %v520_v20, %v287_v23 }
 0x214   :  { %v297_v26 = vmax.f32 %v293_v22, 0.0 }
 0x215   :  { %v296_v25 = vmax.f32 %v288_v24, 0.0 }
 0x217   :  { %661 = vmatprep.mubr.f32.mxu0 %v296_v25 }
 0x218   :  { %662 = vmatmul.mubr.f32.vlgmr.msra.gmra.mrb[2].mxu0 %v297_v26 }
 0x2eb   :  { %v663_v31 = vpop.f32.mrb[2].mxu0 }
 0x2ec   :  { %v393_v32 = vadd.f32 %v663_v31, %v521_v30  ;;  %v387_v33 = vpop.f32.mrb[3].mxu0 }
 0x2ed   :  { %v388_v34 = vadd.f32 %v521_v30, %v387_v33 }
 0x2ee   :  { %v397_v36 = vmax.f32 %v393_v32, 0.0 }
 0x2ef   :  { %v396_v35 = vmax.f32 %v388_v34, 0.0 }
 0x2f1   :  { %696 = vmatprep.mubr.f32.mxu1 %v396_v35 }
 0x2f2   :  { %697 = vmatmul.mubr.f32.vlgmr.msra.gmra.mrb[2].mxu1 %v397_v36 }
 0x3c5   :  { %v698_v38 = vpop.f32.mrb[2].mxu1 }
 0x3c6   :  { %v493_v39 = vadd.f32 %v698_v38, %v522_v37  ;;  %v487_v40 = vpop.f32.mrb[3].mxu1 }
 0x3c7   :  { %v488_v41 = vadd.f32 %v522_v37, %v487_v40 }
 0x3c8   :  { %497 = vst [vmem:[#allocation11 + $0x8] sm:$0xff] %v493_v39 }
 0x3c9   :  { %496 = vst [vmem:[#allocation11] sm:$0xff] %v488_v41 }
 0x3ca   :  { %932 = shalt.err (!%p929_p2)
}
 0x3cb   :  { %s933_s8 = scalar_lea.hbm %s1136_s9, 256 }
 0x3cc   :  { %p934_p3 = scmp.ne.s32.totalorder %s1136_s9, %s933_s8  ;;  %p937_p4 = scmp.lt.u32.totalorder %s933_s8, %s1136_s9 }
 0x3ce   :  { %p939_p5 = pnand %p937_p4, %p934_p3 }
 0x3d0   :  { %942 = shalt.err (!%p939_p5)
}
 0x3d1   :  { %509 = dma.vmem_to_hbm [thread:$0]  %s504_s1, 256, %s1136_s9, [#allocation4], %s953_s21, %s953_s21, %s954_s22  }
 0x3d2   :  { %949 = dma.done.wait [#allocation4], 256  }
 0x3d3   :  { %950 = vsyncadd [#allocation4], 4294967040 }
 0x3d4   :  { %513 = vsyncpa [#allocation3], 1 }
 0x3d5   :  { %514 = vsyncpa [#allocation6], 1 }
 0x3d6   :  { %515 = vsyncpa [#allocation9], 1 }
 0x3d7   :  { %516 = vsyncpa [#allocation4], 1 }

</bundles_post_ra>
